<compile_context>
chip_gen: v7x
topology: tpu7x:2x2x1
jax: 0.10.0
libtpu: 0.0.40
codegen_flags: <defaults>
</compile_context>

<pallas_src>
import jax
import jax.numpy as jnp
from jax.experimental import pallas as pl
from jax.experimental.pallas import tpu as pltpu


def _mlp_policy_kernel(obs_ref, w1_ref, b1_ref, w2_ref, b2_ref,
                       wo_ref, bo_ref, logstd_ref,
                       mean_ref, tril_ref):
    # Hidden layer 1: Linear + tanh  (MXU matmul w/ f32 accumulation, EUP tanh).
    h = jnp.tanh(
        jnp.dot(obs_ref[...], w1_ref[...], preferred_element_type=jnp.float32)
        + b1_ref[...]
    )
    # Hidden layer 2: Linear + tanh.
    h = jnp.tanh(
        jnp.dot(h.astype(w2_ref.dtype), w2_ref[...],
                preferred_element_type=jnp.float32)
        + b2_ref[...]
    )
    # Output layer: Linear (Identity output activation).
    mean = (jnp.dot(h.astype(wo_ref.dtype), wo_ref[...],
                    preferred_element_type=jnp.float32)
            + bo_ref[...])
    mean_ref[...] = mean.astype(mean_ref.dtype)

    # scale_tril diag: clamp(-10, 2), exp, diag. Written as a single grid-
    # invariant (1, ac, ac) block; the batch broadcast happens in the wrapper.
    # Recomputed per grid step (a few 8x8 VPU/EUP ops, fully hidden) so every
    # core writes an identical, fully-initialized block under "parallel".
    logstd = jnp.clip(logstd_ref[...], -10.0, 2.0)           # (1, ac)
    std = jnp.exp(logstd)                                     # (1, ac)
    ac = std.shape[-1]
    row = jax.lax.broadcasted_iota(jnp.int32, (ac, ac), 0)
    col = jax.lax.broadcasted_iota(jnp.int32, (ac, ac), 1)
    diag = jnp.where(row == col, jnp.broadcast_to(std, (ac, ac)), 0.0)
    tril_ref[...] = diag[None, :, :]


def _round_up(x, m):
    return (x + m - 1) // m * m


def mlp_policy_forward(obs, params, *, block_b=512, compute_dtype=jnp.bfloat16):
    """Returns (batch_mean, batch_scale_tril) parameterizing the MultivariateNormal."""
    B, ob_dim = obs.shape
    w1, b1, w2, b2, wo, bo, logstd = params
    size = w1.shape[1]
    ac_dim = wo.shape[1]

    # Batch tile: multiple of 8 (sublane alignment), no larger than padded B.
    tb = min(block_b, _round_up(B, 8))
    tb = _round_up(tb, 8)
    Bp = _round_up(B, tb)
    if Bp != B:
        obs = jnp.pad(obs, ((0, Bp - B), (0, 0)))
    nb = Bp // tb

    cd = compute_dtype
    obs_c = obs.astype(cd)
    w1_c = w1.astype(cd)
    w2_c = w2.astype(cd)
    wo_c = wo.astype(cd)
    b1_r = b1.reshape(1, -1).astype(jnp.float32)
    b2_r = b2.reshape(1, -1).astype(jnp.float32)
    bo_r = bo.reshape(1, -1).astype(jnp.float32)
    logstd_r = logstd.reshape(1, -1).astype(jnp.float32)

    # Weights/biases: constant index_map -> fetched once, VMEM-resident.
    const2 = lambda shape: pl.BlockSpec(shape, lambda i: (0, 0))

    mean_p, tril_diag = pl.pallas_call(
        _mlp_policy_kernel,
        grid=(nb,),
        in_specs=[
            pl.BlockSpec((tb, ob_dim), lambda i: (i, 0)),   # obs: batch-tiled
            const2((ob_dim, size)), const2((1, size)),      # w1, b1
            const2((size, size)), const2((1, size)),        # w2, b2
            const2((size, ac_dim)), const2((1, ac_dim)),    # wo, bo
            const2((1, ac_dim)),                            # logstd
        ],
        out_specs=(
            pl.BlockSpec((tb, ac_dim), lambda i: (i, 0)),        # mean: batch-tiled
            pl.BlockSpec((1, ac_dim, ac_dim), lambda i: (0, 0, 0)),  # diag: invariant
        ),
        out_shape=(
            jax.ShapeDtypeStruct((Bp, ac_dim), jnp.float32),
            jax.ShapeDtypeStruct((1, ac_dim, ac_dim), jnp.float32),
        ),
        compiler_params=pltpu.CompilerParams(
            dimension_semantics=("parallel",),
            vmem_limit_bytes=32 * 1024 * 1024,
        ),
    )(obs_c, w1_c, b1_r, w2_c, b2_r, wo_c, bo_r, logstd_r)

    mean = mean_p[:B]
    scale_tril = jnp.broadcast_to(tril_diag, (B, ac_dim, ac_dim))
    return mean, scale_tril


def init_params(key, ob_dim, ac_dim, size):
    """Deterministic synthetic parameters (n_layers=2 MLP + logstd)."""
    ks = jax.random.split(key, 6)
    w1 = jax.random.normal(ks[0], (ob_dim, size), jnp.float32) * 0.1
    b1 = jax.random.normal(ks[1], (size,), jnp.float32) * 0.01
    w2 = jax.random.normal(ks[2], (size, size), jnp.float32) * 0.1
    b2 = jax.random.normal(ks[3], (size,), jnp.float32) * 0.01
    wo = jax.random.normal(ks[4], (size, ac_dim), jnp.float32) * 0.1
    bo = jax.random.normal(ks[5], (ac_dim,), jnp.float32) * 0.01
    logstd = jnp.zeros((ac_dim,), jnp.float32)  # nn.Parameter(torch.zeros(ac_dim))
    return (w1, b1, w2, b2, wo, bo, logstd)


def reference_forward(obs, params, compute_dtype=jnp.float32):
    """Pure-JAX reference mirroring the kernel's input-cast recipe."""
    w1, b1, w2, b2, wo, bo, logstd = params
    cd = compute_dtype
    h = jnp.tanh(jnp.dot(obs.astype(cd), w1.astype(cd),
                         preferred_element_type=jnp.float32) + b1)
    h = jnp.tanh(jnp.dot(h.astype(cd), w2.astype(cd),
                         preferred_element_type=jnp.float32) + b2)
    mean = jnp.dot(h.astype(cd), wo.astype(cd),
                   preferred_element_type=jnp.float32) + bo
    std = jnp.exp(jnp.clip(logstd, -10.0, 2.0))
    tril = jnp.broadcast_to(jnp.diag(std)[None],
                            (obs.shape[0], std.shape[0], std.shape[0]))
    return mean, tril


# TODO(synk): discrete branch (Categorical(logits)) is the same MLP kernel with
# ac_dim logits and no logstd/scale_tril; distribution sampling stays host-side.

if __name__ == "__main__":
    B, ob_dim, ac_dim, n_layers, size = 100, 16, 8, 2, 32  # B=100 exercises padding

    key = jax.random.PRNGKey(0)
    k_obs, k_par = jax.random.split(key)
    obs = jax.random.normal(k_obs, (B, ob_dim), jnp.float32)
    params = init_params(k_par, ob_dim, ac_dim, size)

    # f32 path: exact original-module numerics (grid = 4 batch tiles of 32).
    mean32, tril32 = mlp_policy_forward(obs, params, block_b=32,
                                        compute_dtype=jnp.float32)
    jax.block_until_ready((mean32, tril32))
    ref_mean32, ref_tril32 = reference_forward(obs, params, jnp.float32)
    assert mean32.shape == (B, ac_dim) and tril32.shape == (B, ac_dim, ac_dim)
    assert jnp.allclose(mean32, ref_mean32, atol=1e-5, rtol=1e-5)
    assert jnp.allclose(tril32, ref_tril32, atol=1e-5, rtol=1e-5)

    # bf16-input path (v6e/v7x optimization): f32 accumulation, compared against
    # a reference using the same input casts.
    mean16, tril16 = mlp_policy_forward(obs, params, block_b=32,
                                        compute_dtype=jnp.bfloat16)
    jax.block_until_ready((mean16, tril16))
    ref_mean16, ref_tril16 = reference_forward(obs, params, jnp.bfloat16)
    assert jnp.allclose(mean16, ref_mean16, atol=1e-2, rtol=1e-2)
    assert jnp.allclose(tril16, ref_tril16, atol=1e-5, rtol=1e-5)

    print("KERNEL_OK")
</pallas_src>

<mosaic_0001>
module attributes {stable_mosaic.version = 11 : i64} {
  func.func @_mlp_policy_kernel(%arg0: i32, %arg1: memref<32x16xf32, #tpu.memory_space<vmem>>, %arg2: memref<16x32xf32, #tpu.memory_space<vmem>>, %arg3: memref<1x32xf32, #tpu.memory_space<vmem>>, %arg4: memref<32x32xf32, #tpu.memory_space<vmem>>, %arg5: memref<1x32xf32, #tpu.memory_space<vmem>>, %arg6: memref<32x8xf32, #tpu.memory_space<vmem>>, %arg7: memref<1x8xf32, #tpu.memory_space<vmem>>, %arg8: memref<1x8xf32, #tpu.memory_space<vmem>>, %arg9: memref<32x8xf32, #tpu.memory_space<vmem>>, %arg10: memref<1x8x8xf32, #tpu.memory_space<vmem>>) attributes {dimension_semantics = [#tpu.dimension_semantics<parallel>], iteration_bounds = array<i64: 4>, scalar_prefetch = 0 : i64, scratch_operands = 0 : i64, tpu.core_type = #tpu.core_type<tc>, window_params = [{transform_indices = @transform_0, window_bounds = array<i64: 32, 16>}, {pipeline_mode = #tpu.pipeline_mode<synchronous>, transform_indices = @transform_1, window_bounds = array<i64: 16, 32>}, {pipeline_mode = #tpu.pipeline_mode<synchronous>, transform_indices = @transform_2, window_bounds = array<i64: 1, 32>}, {pipeline_mode = #tpu.pipeline_mode<synchronous>, transform_indices = @transform_3, window_bounds = array<i64: 32, 32>}, {pipeline_mode = #tpu.pipeline_mode<synchronous>, transform_indices = @transform_4, window_bounds = array<i64: 1, 32>}, {pipeline_mode = #tpu.pipeline_mode<synchronous>, transform_indices = @transform_5, window_bounds = array<i64: 32, 8>}, {pipeline_mode = #tpu.pipeline_mode<synchronous>, transform_indices = @transform_6, window_bounds = array<i64: 1, 8>}, {pipeline_mode = #tpu.pipeline_mode<synchronous>, transform_indices = @transform_7, window_bounds = array<i64: 1, 8>}, {transform_indices = @transform_8, window_bounds = array<i64: 32, 8>}, {pipeline_mode = #tpu.pipeline_mode<synchronous>, transform_indices = @transform_9, window_bounds = array<i64: 1, 8, 8>}]} {
    %c0 = arith.constant 0 : index
    %c0_0 = arith.constant 0 : index
    %0 = vector.load %arg1[%c0, %c0_0] : memref<32x16xf32, #tpu.memory_space<vmem>>, vector<32x16xf32>
    %c0_1 = arith.constant 0 : index
    %c0_2 = arith.constant 0 : index
    %1 = vector.load %arg2[%c0_1, %c0_2] : memref<16x32xf32, #tpu.memory_space<vmem>>, vector<16x32xf32>
    %cst = arith.constant dense<0.000000e+00> : vector<32x32xf32>
    %2 = tpu.matmul %0, %1, %cst {dimension_numbers = #tpu.dot_dimension_numbers<[1], [0], [0], [1], [0, 0, 1, 1], [], []>} : vector<32x16xf32>, vector<16x32xf32>, vector<32x32xf32> -> vector<32x32xf32>
    %c0_3 = arith.constant 0 : index
    %c0_4 = arith.constant 0 : index
    %3 = vector.load %arg3[%c0_3, %c0_4] : memref<1x32xf32, #tpu.memory_space<vmem>>, vector<1x32xf32>
    %4 = vector.broadcast %3 : vector<1x32xf32> to vector<32x32xf32>
    %5 = arith.addf %2, %4 : vector<32x32xf32>
    %6 = math.tanh %5 : vector<32x32xf32>
    %c0_5 = arith.constant 0 : index
    %c0_6 = arith.constant 0 : index
    %7 = vector.load %arg4[%c0_5, %c0_6] : memref<32x32xf32, #tpu.memory_space<vmem>>, vector<32x32xf32>
    %cst_7 = arith.constant dense<0.000000e+00> : vector<32x32xf32>
    %8 = tpu.matmul %6, %7, %cst_7 {dimension_numbers = #tpu.dot_dimension_numbers<[1], [0], [0], [1], [0, 0, 1, 1], [], []>} : vector<32x32xf32>, vector<32x32xf32>, vector<32x32xf32> -> vector<32x32xf32>
    %c0_8 = arith.constant 0 : index
    %c0_9 = arith.constant 0 : index
    %9 = vector.load %arg5[%c0_8, %c0_9] : memref<1x32xf32, #tpu.memory_space<vmem>>, vector<1x32xf32>
    %10 = vector.broadcast %9 : vector<1x32xf32> to vector<32x32xf32>
    %11 = arith.addf %8, %10 : vector<32x32xf32>
    %12 = math.tanh %11 : vector<32x32xf32>
    %c0_10 = arith.constant 0 : index
    %c0_11 = arith.constant 0 : index
    %13 = vector.load %arg6[%c0_10, %c0_11] : memref<32x8xf32, #tpu.memory_space<vmem>>, vector<32x8xf32>
    %cst_12 = arith.constant dense<0.000000e+00> : vector<32x8xf32>
    %14 = tpu.matmul %12, %13, %cst_12 {dimension_numbers = #tpu.dot_dimension_numbers<[1], [0], [0], [1], [0, 0, 1, 1], [], []>} : vector<32x32xf32>, vector<32x8xf32>, vector<32x8xf32> -> vector<32x8xf32>
    %c0_13 = arith.constant 0 : index
    %c0_14 = arith.constant 0 : index
    %15 = vector.load %arg7[%c0_13, %c0_14] : memref<1x8xf32, #tpu.memory_space<vmem>>, vector<1x8xf32>
    %16 = vector.broadcast %15 : vector<1x8xf32> to vector<32x8xf32>
    %17 = arith.addf %14, %16 : vector<32x8xf32>
    %c0_15 = arith.constant 0 : index
    %c0_16 = arith.constant 0 : index
    %18 = vector.load %arg9[%c0_15, %c0_16] : memref<32x8xf32, #tpu.memory_space<vmem>>, vector<32x8xf32>
    tpu.vector_store %arg9[%c0_15, %c0_16], %17 {strides = array<i32>} : memref<32x8xf32, #tpu.memory_space<vmem>>, vector<32x8xf32>,
    %c0_17 = arith.constant 0 : index
    %c0_18 = arith.constant 0 : index
    %19 = vector.load %arg8[%c0_17, %c0_18] : memref<1x8xf32, #tpu.memory_space<vmem>>, vector<1x8xf32>
    %cst_19 = arith.constant -1.000000e+01 : f32
    %cst_20 = arith.constant 2.000000e+00 : f32
    %20 = vector.broadcast %cst_19 : f32 to vector<1x8xf32>
    %21 = arith.maximumf %20, %19 : vector<1x8xf32>
    %22 = vector.broadcast %cst_20 : f32 to vector<1x8xf32>
    %23 = arith.minimumf %22, %21 : vector<1x8xf32>
    %24 = math.exp %23 : vector<1x8xf32>
    %25 = tpu.iota {dimensions = array<i32: 0>} : vector<8x8xi32>
    %26 = tpu.iota {dimensions = array<i32: 1>} : vector<8x8xi32>
    %27 = arith.cmpi eq, %25, %26 : vector<8x8xi32>
    %28 = vector.shape_cast %24 : vector<1x8xf32> to vector<1x8xf32>
    %29 = vector.broadcast %28 : vector<1x8xf32> to vector<8x8xf32>
    %cst_21 = arith.constant 0.000000e+00 : f32
    %30 = vector.broadcast %cst_21 : f32 to vector<8x8xf32>
    %31 = arith.select %27, %29, %30 : vector<8x8xi1>, vector<8x8xf32>
    %32 = vector.shape_cast %31 : vector<8x8xf32> to vector<1x8x8xf32>
    %c0_22 = arith.constant 0 : index
    %c0_23 = arith.constant 0 : index
    %c0_24 = arith.constant 0 : index
    %33 = vector.load %arg10[%c0_22, %c0_23, %c0_24] : memref<1x8x8xf32, #tpu.memory_space<vmem>>, vector<1x8x8xf32>
    tpu.vector_store %arg10[%c0_22, %c0_23, %c0_24], %32 {strides = array<i32>} : memref<1x8x8xf32, #tpu.memory_space<vmem>>, vector<1x8x8xf32>,
    return
  }
  func.func @transform_0(%arg0: i32) -> (i32, i32) {
    %c0_i32 = arith.constant 0 : i32
    %c0_i32_0 = arith.constant 0 : i32
    return %arg0, %c0_i32 : i32, i32
  }
  func.func @transform_1(%arg0: i32) -> (i32, i32) {
    %c0_i32 = arith.constant 0 : i32
    %c0_i32_0 = arith.constant 0 : i32
    %c0_i32_1 = arith.constant 0 : i32
    return %c0_i32, %c0_i32_0 : i32, i32
  }
  func.func @transform_2(%arg0: i32) -> (i32, i32) {
    %c0_i32 = arith.constant 0 : i32
    %c0_i32_0 = arith.constant 0 : i32
    %c0_i32_1 = arith.constant 0 : i32
    return %c0_i32, %c0_i32_0 : i32, i32
  }
  func.func @transform_3(%arg0: i32) -> (i32, i32) {
    %c0_i32 = arith.constant 0 : i32
    %c0_i32_0 = arith.constant 0 : i32
    %c0_i32_1 = arith.constant 0 : i32
    return %c0_i32, %c0_i32_0 : i32, i32
  }
  func.func @transform_4(%arg0: i32) -> (i32, i32) {
    %c0_i32 = arith.constant 0 : i32
    %c0_i32_0 = arith.constant 0 : i32
    %c0_i32_1 = arith.constant 0 : i32
    return %c0_i32, %c0_i32_0 : i32, i32
  }
  func.func @transform_5(%arg0: i32) -> (i32, i32) {
    %c0_i32 = arith.constant 0 : i32
    %c0_i32_0 = arith.constant 0 : i32
    %c0_i32_1 = arith.constant 0 : i32
    return %c0_i32, %c0_i32_0 : i32, i32
  }
  func.func @transform_6(%arg0: i32) -> (i32, i32) {
    %c0_i32 = arith.constant 0 : i32
    %c0_i32_0 = arith.constant 0 : i32
    %c0_i32_1 = arith.constant 0 : i32
    return %c0_i32, %c0_i32_0 : i32, i32
  }
  func.func @transform_7(%arg0: i32) -> (i32, i32) {
    %c0_i32 = arith.constant 0 : i32
    %c0_i32_0 = arith.constant 0 : i32
    %c0_i32_1 = arith.constant 0 : i32
    return %c0_i32, %c0_i32_0 : i32, i32
  }
  func.func @transform_8(%arg0: i32) -> (i32, i32) {
    %c0_i32 = arith.constant 0 : i32
    %c0_i32_0 = arith.constant 0 : i32
    return %arg0, %c0_i32 : i32, i32
  }
  func.func @transform_9(%arg0: i32) -> (i32, i32, i32) {
    %c0_i32 = arith.constant 0 : i32
    %c0_i32_0 = arith.constant 0 : i32
    %c0_i32_1 = arith.constant 0 : i32
    %c0_i32_2 = arith.constant 0 : i32
    return %c0_i32, %c0_i32_0, %c0_i32_1 : i32, i32, i32
  }
}

</mosaic_0001>

<bundles_post_ra>
// kernel: tpu_custom_call.1
= control target key start
LH: loop header
LB: loop body
LE: loop exit
PB: predicated region body
PF: predicated region fallthrough
CT: control target
= control target key end

     0   :  { %15 = vsyncpa [#allocation3], 0  ;;  %s1004_s30 = smov 0   ;;  %s1113_s0 = inlined_call_operand.vmem [shape: f32[128,16], index: 0, kind: input, shape index: {}]   ;;  %s1114_s1 = inlined_call_operand.vmem [shape: f32[16,32], index: 1, kind: input, shape index: {}]   ;;  %s1115_s2 = inlined_call_operand.vmem [shape: f32[1,32], index: 2, kind: input, shape index: {}]   ;;  %s1116_s3 = inlined_call_operand.vmem [shape: f32[32,32], index: 3, kind: input, shape index: {}]   ;;  %s1117_s4 = inlined_call_operand.vmem [shape: f32[1,32], index: 4, kind: input, shape index: {}]   ;;  %s1118_s5 = inlined_call_operand.vmem [shape: f32[32,8], index: 5, kind: input, shape index: {}]   ;;  %s1119_s6 = inlined_call_operand.vmem [shape: f32[1,8], index: 6, kind: input, shape index: {}]   ;;  %s1120_s7 = inlined_call_operand.vmem [shape: f32[1,8], index: 7, kind: input, shape index: {}]   ;;  %s1121_s8 = inlined_call_operand.vmem [shape: f32[128,8], index: 8, kind: output, shape index: {0}]   ;;  %s1122_s9 = inlined_call_operand.hbm [shape: f32[1,8,8], index: 9, kind: output, shape index: {1}]  }
   0x1 LB: > { %s774_s10 = sadd.s32 4294967295, %s951_s30   ;;  %p778_p0 = scmp.ge.s32.totalorder %s951_s30, 1  ;;  %s951_s30 = sphi %s1004_s30, %s21_s30  }
   0x2   : > { %p287_p1 = scmp.lt.s32.totalorder %s951_s30, 5 }
   0x4   : > { %p288_p2 = pnand %p778_p0, %p287_p1 }
   0x5   : > { %v339_v0 = vld [vmem:[%s1114_s1] sm:$0xff] (!%p288_p2)  ;;  %v340_v1 = vld [vmem:[%s1114_s1 + $0x8] sm:$0xff] (!%p288_p2)  ;;  %s779_s15 = sshll.u32 (!%p288_p2), %s774_s10, 2  ;;  %vm348_vm0 = vcmask (!%p288_p2), 130048   ;;  %v452_v10 = vld [vmem:[%s1116_s3 + $0x10] sm:$0xff] (!%p288_p2)  ;;  %vm461_vm1 = vcmask (!%p288_p2), 261120   ;;  %v681_v49 = vlaneseq (!%p288_p2) }
   0x6   : > { %291 = sbr.rel (%p288_p2) target bundleno = 694 (0x2b6), region = 52  ;;  %v862_v2 = vpack.c.bf16 (!%p288_p2), %v340_v1, %v339_v0  ;;  %p324_p3 = scmp.lt.s32.totalorder (!%p288_p2), %s779_s15, 15  ;;  %v450_v7 = vld [vmem:[%s1116_s3] sm:$0xff] (!%p288_p2)  ;;  %v451_v8 = vld [vmem:[%s1116_s3 + $0x8] sm:$0xff] (!%p288_p2)  ;;  %v453_v11 = vld [vmem:[%s1116_s3 + $0x18] sm:$0xff] (!%p288_p2)  ;;  %vm671_vm3 = vcmask (!%p288_p2), 64512  }
   0x7   : > { %v866_v9 = vpack.c.bf16 (!%p288_p2), %v451_v8, %v450_v7  ;;  %v870_v12 = vpack.c.bf16 (!%p288_p2), %v453_v11, %v452_v10  ;;  %v783_v13 = vld [vmem:[%s1115_s2] ss:$0 sm:$0xff] (!%p288_p2)  ;;  %v564_v27 = vld [vmem:[%s1118_s5 + $0x8] sm:$0xff] (!%p288_p2)  ;;  %v565_v29 = vld [vmem:[%s1118_s5 + $0x10] sm:$0xff] (!%p288_p2)  ;;  %v682_v50 = vshrl.u32 (!%p288_p2), %v681_v49, 7  ;;  %v684_v53 = vand.u32 (!%p288_p2), 127, %v681_v49 }
   0x8   : > { %863 = vmatprep.subr.bf16.mxu0 (!%p288_p2), %v862_v2  ;;  %v563_v26 = vld [vmem:[%s1118_s5] sm:$0xff] (!%p288_p2)  ;;  %v566_v30 = vld [vmem:[%s1118_s5 + $0x18] sm:$0xff] (!%p288_p2)  ;;  %p1071_p4 = scmp.eq.s32.totalorder (!%p288_p2), %s774_s10, 3  ;;  %s953_s26 = smov (!%p288_p2), [#allocation2]  }
   0x9   : > { %865 = vmatpush3.bf16.msra.mxu0 (!%p288_p2), %v862_v2  ;;  %867 = vmatprep.subr.bf16.mxu1 (!%p288_p2), %v866_v9  ;;  %v874_v28 = vpack.c.bf16 (!%p288_p2), %v564_v27, %v563_v26  ;;  %v878_v31 = vpack.c.bf16 (!%p288_p2), %v566_v30, %v565_v29  ;;  %v788_v32 = vld [vmem:[%s1117_s4] ss:$0 sm:$0xff] (!%p288_p2)  ;;  %v689_v51 = vsub.s32 (!%p288_p2), 0, %v682_v50  ;;  %vm685_vm2 = vcmp.eq.s32.totalorder (!%p288_p2), %v682_v50, %v684_v53  ;;  %s710_s27 = sshll.u32 (!%p288_p2), %s953_s26, 4  ;;  %s711_s27 = int_to_ptr.vmem [resolvable:$true] %s710_s27 }
   0xa   : > { %869 = vmatpush3.bf16.msra.mxu1 (!%p288_p2), %v866_v9  ;;  %v676_v45 = vld [vmem:[%s1120_s7] sm:$0x1] (!%p288_p2)  ;;  %s915_s28 = scalar_lea.vmem (!%p288_p2), %s711_s27, 128  ;;  %p922_p8 = scmp.lt.s32.totalorder (!%p288_p2), %s711_s27, %s711_s27 }
   0xb   : > { %871 = vmatprep.subr.bf16.mxu1 (!%p288_p2), %v870_v12  ;;  %875 = vmatprep.subr.bf16.mxu0 (!%p288_p2), %v874_v28  ;;  %v677_v46 = vmax.f32 (!%p288_p2), %v676_v45, -10.0  ;;  %p916_p5 = scmp.ne.s32.totalorder (!%p288_p2), %s711_s27, %s915_s28  ;;  %p923_p9 = scmp.lt.s32.totalorder (!%p288_p2), %s915_s28, %s915_s28 }
   0xd   : > { %s1125_s15 = smov (!%p324_p3, %s779_s15), 15  ;;  %v678_v47 = vmin.f32 %v677_v46, 2.0  ;;  %p917_p6 = pnand %p916_p5, %p1071_p4 }
   0xe   : > { %s780_s16 = sshll.u32 %s1125_s15, 3  ;;  %873 = vmatpush3.bf16.msra.mxu1 %v870_v12  ;;  %p924_p10 = por %p923_p9, %p922_p8 }
   0xf   : > { %s327_s19 = scalar_lea.vmem %s1113_s0, %s780_s16  ;;  %v679_v48 = vmul.f32 1.442695, %v678_v47  ;;  %p918_p7 = pneg %p917_p6 }
  0x10   : > { %v335_v3 = vld [vmem:[%s327_s19] sm:$0xff]  ;;  %v336_v4 = vld [vmem:[%s327_s19 + $0x8] sm:$0xff]  ;;  %v337_v5 = vld [vmem:[%s327_s19 + $0x10] sm:$0xff] }
  0x11   : > { %828 = vmatprep.mubr.msk.f32.mxu0 %vm348_vm0, %v335_v3  ;;  %v338_v6 = vld [vmem:[%s327_s19 + $0x18] sm:$0xff]  ;;  %p925_p11 = pnand %p924_p10, %p918_p7 }
  0x12   : > { %829 = vmatmul.mubr.msk.f32.vlgmr.msra.gmra.mrb[0].mxu0 %vm348_vm0, %v336_v4 }
  0x13   : > { %831 = vmatprep.mubr.msk.f32.mxu0 %vm348_vm0, %v337_v5  ;;  %877 = vmatpush3.bf16.msra.mxu0 %v874_v28 }
  0x14   : > { %879 = vmatprep.subr.bf16.mxu0 %v878_v31 }
  0x16   : > { %832 = vmatmul.mubr.msk.f32.gmra.mrb[2].mxu0 %vm348_vm0, %v338_v6 }
  0x17   : > { %881 = vmatpush3.bf16.msra.mxu0 %v878_v31 }
  0xe5   : > { %v830_v14 = vpop.f32.mrb[0].mxu0 }
  0xe6   : > { %v433_v15 = vadd.f32 %v830_v14, %v783_v13  ;;  %v427_v16 = vpop.f32.mrb[1].mxu0 }
  0xe7   : > { %v428_v17 = vadd.f32 %v783_v13, %v427_v16 }
  0xe9   : > { %897 = vtanh.f32 %v428_v17  ;;  %v833_v18 = vpop.f32.mrb[2].mxu0 }
  0xea   : > { %899 = vtanh.f32 %v433_v15  ;;  %v443_v19 = vadd.f32 %v833_v18, %v783_v13  ;;  %v437_v20 = vpop.f32.mrb[3].mxu0 }
  0xeb   : > { %v438_v21 = vadd.f32 %v783_v13, %v437_v20 }
  0xed   : > { %901 = vtanh.f32 %v438_v21 }
  0xee   : > { %903 = vtanh.f32 %v443_v19 }
  0xf3   : > { %v898_v22 = vpop.eup %897 }
  0xf4   : > { %v900_v23 = vpop.eup %899  ;;  %842 = vmatprep.mubr.msk.f32.mxu1 %vm461_vm1, %v898_v22 }
  0xf5   : > { %843 = vmatmul.mubr.msk.f32.vlgmr.msra.gmra.mrb[0].mxu1 %vm461_vm1, %v900_v23 }
  0xf7   : > { %v902_v24 = vpop.eup %901 }
  0xf8   : > { %v904_v25 = vpop.eup %903  ;;  %845 = vmatprep.mubr.msk.f32.mxu1 %vm461_vm1, %v902_v24 }
  0xf9   : > { %846 = vmatmul.mubr.msk.f32.gmra.mrb[2].mxu1 %vm461_vm1, %v904_v25 }
 0x1c8   : > { %v844_v33 = vpop.f32.mrb[0].mxu1 }
 0x1c9   : > { %v546_v34 = vadd.f32 %v844_v33, %v788_v32  ;;  %v540_v35 = vpop.f32.mrb[1].mxu1 }
 0x1ca   : > { %v541_v36 = vadd.f32 %v788_v32, %v540_v35 }
 0x1cc   : > { %905 = vtanh.f32 %v541_v36  ;;  %v847_v37 = vpop.f32.mrb[2].mxu1 }
 0x1cd   : > { %907 = vtanh.f32 %v546_v34  ;;  %v556_v38 = vadd.f32 %v847_v37, %v788_v32  ;;  %v550_v39 = vpop.f32.mrb[3].mxu1 }
 0x1ce   : > { %v551_v40 = vadd.f32 %v788_v32, %v550_v39 }
 0x1d0   : > { %909 = vtanh.f32 %v551_v40 }
 0x1d1   : > { %911 = vtanh.f32 %v556_v38 }
 0x1d2   : > { %913 = vpow2.f32 %v679_v48 }
 0x1d6   : > { %v906_v41 = vpop.eup %905 }
 0x1d7   : > { %v908_v42 = vpop.eup %907  ;;  %856 = vmatprep.mubr.msk.f32.mxu0 %vm461_vm1, %v906_v41 }
 0x1d8   : > { %857 = vmatmul.mubr.msk.f32.vlgmr.msra.gmra.mrb[4].mxu0 %vm461_vm1, %v908_v42 }
 0x1da   : > { %v910_v43 = vpop.eup %909 }
 0x1db   : > { %v912_v44 = vpop.eup %911  ;;  %859 = vmatprep.mubr.msk.f32.mxu0 %vm461_vm1, %v910_v43 }
 0x1dc   : > { %860 = vmatmul.mubr.msk.f32.gmra.mrb[6].mxu0 %vm461_vm1, %v912_v44  ;;  %v914_v52 = vpop.eup %913 }
 0x1dd   : > { %v690_v54 = vrot.slane %v914_v52, %v689_v51 }
 0x1df   : > { %v692_v55 = vsel %vm685_vm2, %v690_v54, 0.0 }
 0x1e0   : > { %693 = vst.msk [vmem:[#allocation2] sm:$0xff] %vm671_vm3, %v692_v55 }
 0x1e1   : > { %928 = shalt.err (!%p925_p11)
}
 0x1e2   : > { %s929_s11 = scalar_lea.hbm %s1122_s9, 128 }
 0x1e3   : > { %p930_p12 = scmp.ne.s32.totalorder %s1122_s9, %s929_s11  ;;  %p935_p1 = scmp.lt.u32.totalorder %s929_s11, %s1122_s9 }
 0x1e5   : > { %p931_p13 = pnand %p930_p12, %p1071_p4 }
 0x1e7   : > { %p932_p0 = pneg %p931_p13 }
 0x1e9   : > { %p937_p2 = pnand %p935_p1, %p932_p0 }
 0x1eb   : > { %940 = shalt.err (!%p937_p2)
}
 0x1ec   : > { %883 = dma.vmem_to_hbm [thread:$0]  (%p1071_p4), %s711_s27, 128, %s1122_s9, [#allocation3]   ;;  %v793_v56 = vld [vmem:[%s1119_s6] ss:$0 sm:$0xff] }
 0x1ed   : > { %s333_s24 = scalar_lea.vmem %s1121_s8, %s780_s16 }
 0x2ab   : > { %v858_v57 = vpop.f32.mrb[4].mxu0 }
 0x2ac   : > { %v658_v58 = vadd.f32 %v858_v57, %v793_v56  ;;  %v652_v59 = vpop.f32.mrb[5].mxu0 }
 0x2ad   : > { %v653_v60 = vadd.f32 %v793_v56, %v652_v59 }
 0x2ae   : > { %673 = vst.msk [vmem:[%s333_s24 + $0x8] sm:$0xff] %vm671_vm3, %v658_v58 }
 0x2af   : > { %672 = vst.msk [vmem:[%s333_s24] sm:$0xff] %vm671_vm3, %v653_v60  ;;  %v861_v61 = vpop.f32.mrb[6].mxu0 }
 0x2b0   : > { %v668_v62 = vadd.f32 %v861_v61, %v793_v56  ;;  %v662_v63 = vpop.f32.mrb[7].mxu0 }
 0x2b1   : > { %v663_v0 = vadd.f32 %v793_v56, %v662_v63 }
 0x2b2   : > { %675 = vst.msk [vmem:[%s333_s24 + $0x18] sm:$0xff] %vm671_vm3, %v668_v62 }
 0x2b3   : > { %674 = vst.msk [vmem:[%s333_s24 + $0x10] sm:$0xff] %vm671_vm3, %v663_v0 }
 0x2b4   : > { %946 = dma.done.wait (%p1071_p4), [#allocation3], 128  }
 0x2b5   : > { %948 = vsyncadd (%p1071_p4), [#allocation3], 4294967168 }
 0x2b6 PF: > { %s21_s30 = sadd.s32 1, %s951_s30  }
 0x2b7   : > { %p18_p3 = scmp.ge.s32.totalorder %s21_s30, 6  }
 0x2b9   :  { %20 = sbr.rel (!%p18_p3) target bundleno = 1 (0x1), region = 91 }
 0x2c0   :  { %731 = vsyncpa [#allocation3], 1 }
 0x2c1   :  { %733 = vsyncpa [#allocation3 + $0x1], 1 }

</bundles_post_ra>
